<compile_context>
chip_gen: v7x
topology: tpu7x:2x2x1
jax: 0.10.0
libtpu: 0.0.40
codegen_flags: <defaults>
</compile_context>

<pallas_src>
import functools
import math

import jax
import jax.numpy as jnp
from jax import lax
from jax.experimental import pallas as pl
from jax.experimental.pallas import tpu as pltpu

# ---- model config (small, consistent with the module) ----
NUM_HEADS = 4
EMB_DIM = 32
HEAD_DIM = EMB_DIM // NUM_HEADS
BATCH = 2
SEQ = 8  # num_patches + 1

LANE = 128  # TPU lane width; projected output padded to a multiple of this.


def mhsa_kernel(x_ref, wq_ref, wk_ref, wv_ref, wp_ref, bp_ref, o_ref,
                *, batch, seq, num_heads, head_dim):
    B, N, H, D = batch, seq, num_heads, head_dim
    EP = o_ref.shape[-1]              # lane-padded output width (multiple of 128)
    scale = 1.0 / math.sqrt(D)

    x = x_ref[...]                    # (B*N, E) — batch and sequence fused

    # Per-batch f32 accumulators for the output projection (lane-dense EP columns).
    accs = [jnp.zeros((N, EP), dtype=jnp.float32) for _ in range(B)]

    for h in range(H):                # static unroll over heads
        # Per-head projections; head structure lives entirely in the pre-split
        # weights, so no lane-offset slicing of activations is needed.
        q = jnp.dot(x, wq_ref[h], preferred_element_type=jnp.float32)   # (B*N, D)
        k = jnp.dot(x, wk_ref[h], preferred_element_type=jnp.float32)
        v = jnp.dot(x, wv_ref[h], preferred_element_type=jnp.float32)

        for b in range(B):            # static unroll; sublane-tile-aligned row slices
            qb = q[b * N:(b + 1) * N, :]          # (N, D)
            kb = k[b * N:(b + 1) * N, :]
            vb = v[b * N:(b + 1) * N, :]

            # Scores: contract last dims directly -> no explicit k.T / XLU transpose.
            s = lax.dot_general(qb, kb, (((1,), (1,)), ((), ())),
                                preferred_element_type=jnp.float32) * scale  # (N, N)
            s = s - jnp.max(s, axis=-1, keepdims=True)
            p = jnp.exp(s)
            p = p * pl.reciprocal(jnp.sum(p, axis=-1, keepdims=True), approx=True)

            o = jnp.dot(p, vb, preferred_element_type=jnp.float32)       # (N, D)

            # Absorb 'b h n d -> b n (h d)' + proj into an accumulated per-head matmul.
            accs[b] = accs[b] + jnp.dot(o, wp_ref[h],
                                        preferred_element_type=jnp.float32)  # (N, EP)

    bias = bp_ref[...]                # (1, EP), zero-padded past E
    for b in range(B):
        # Full-lane (N, EP) store at a sublane-aligned row offset -> unmasked vst.
        o_ref[b * N:(b + 1) * N, :] = (accs[b] + bias).astype(o_ref.dtype)
    # TODO(synk): attn_dropout / proj_dropout are identity in eval mode; not implemented.


def mhsa_pallas(x, w_qkv, w_proj, b_proj, *, num_heads):
    B, N, E = x.shape
    H = num_heads
    D = E // H
    EP = ((E + LANE - 1) // LANE) * LANE   # lane-dense padded output width

    # --- free, one-time re-layouts done outside the kernel (plain XLA ops) ---
    # qkv weight columns are laid out '(three h d)' -> split into per-head (E, D) slabs.
    w3 = w_qkv.reshape(E, 3, H, D)
    wq_h = jnp.transpose(w3[:, 0], (1, 0, 2))      # (H, E, D)
    wk_h = jnp.transpose(w3[:, 1], (1, 0, 2))      # (H, E, D)
    wv_h = jnp.transpose(w3[:, 2], (1, 0, 2))      # (H, E, D)
    # proj weight rows per head, zero-padded to EP output lanes for lane-dense stores.
    wp_h = jnp.zeros((H, D, EP), w_proj.dtype).at[:, :, :E].set(w_proj.reshape(H, D, E))
    bp = jnp.zeros((1, EP), b_proj.dtype).at[:, :E].set(b_proj)

    x2 = x.reshape(B * N, E)                       # fuse batch+seq for the projections

    kernel = functools.partial(mhsa_kernel, batch=B, seq=N,
                               num_heads=H, head_dim=D)

    out_pad = pl.pallas_call(
        kernel,
        out_shape=jax.ShapeDtypeStruct((B * N, EP), x.dtype),
        grid_spec=pltpu.PrefetchScalarGridSpec(
            num_scalar_prefetch=0,
            # Single grid step: per-step overhead is paid once; the whole problem
            # fits trivially in VMEM on v5e/v6e/v7x.
            # (v7x note: grid=(B,) with dimension_semantics=("parallel",) would shard
            #  the batch across its 2 TensorCores — benchmark both if targeting v7x.)
            grid=(1,),
            in_specs=[
                pl.BlockSpec((B * N, E), lambda i: (0, 0)),
                pl.BlockSpec((H, E, D), lambda i: (0, 0, 0)),
                pl.BlockSpec((H, E, D), lambda i: (0, 0, 0)),
                pl.BlockSpec((H, E, D), lambda i: (0, 0, 0)),
                pl.BlockSpec((H, D, EP), lambda i: (0, 0, 0)),
                pl.BlockSpec((1, EP), lambda i: (0, 0)),
            ],
            out_specs=pl.BlockSpec((B * N, EP), lambda i: (0, 0)),
        ),
        compiler_params=pltpu.CompilerParams(
            dimension_semantics=("arbitrary",)),
    )(x2, wq_h, wk_h, wv_h, wp_h, bp)

    return out_pad[:, :E].reshape(B, N, E)


def mhsa_ref(x, w_qkv, w_proj, b_proj, *, num_heads):
    B, N, E = x.shape
    D = E // num_heads
    qkv = jnp.einsum("bne,ef->bnf", x, w_qkv)                 # (B, N, 3E)
    qkv = qkv.reshape(B, N, 3, num_heads, D)                  # (three h d) split
    qkv = jnp.transpose(qkv, (2, 0, 3, 1, 4))                 # (3, B, H, N, D)
    q, k, v = qkv[0], qkv[1], qkv[2]
    s = jnp.einsum("bhnd,bhmd->bhnm", q, k) / math.sqrt(D)
    p = jax.nn.softmax(s, axis=-1)
    o = jnp.einsum("bhnm,bhmd->bhnd", p, v)
    o = jnp.transpose(o, (0, 2, 1, 3)).reshape(B, N, E)
    return jnp.einsum("bne,ef->bnf", o, w_proj) + b_proj[0]


if __name__ == "__main__":
    key = jax.random.PRNGKey(0)
    kx, kq, kp, kb = jax.random.split(key, 4)

    x = jax.random.normal(kx, (BATCH, SEQ, EMB_DIM), dtype=jnp.float32)
    # deterministic param init (shapes from nn.Linear(E, 3E, bias=False) / nn.Linear(E, E))
    w_qkv = jax.random.normal(kq, (EMB_DIM, 3 * EMB_DIM), dtype=jnp.float32) * 0.05
    w_proj = jax.random.normal(kp, (EMB_DIM, EMB_DIM), dtype=jnp.float32) * 0.05
    b_proj = jax.random.normal(kb, (1, EMB_DIM), dtype=jnp.float32) * 0.05

    out = mhsa_pallas(x, w_qkv, w_proj, b_proj, num_heads=NUM_HEADS)
    out = jax.block_until_ready(out)

    ref = mhsa_ref(x, w_qkv, w_proj, b_proj, num_heads=NUM_HEADS)
    assert out.shape == (BATCH, SEQ, EMB_DIM)
    # Tolerance relaxed slightly (1e-3) to cover pl.reciprocal(approx=True) in the softmax.
    assert jnp.allclose(out, ref, atol=1e-3, rtol=1e-3), "mismatch vs reference"

    print("KERNEL_OK")
</pallas_src>

<mosaic_0001>
module attributes {stable_mosaic.version = 11 : i64} {
  func.func @mhsa_kernel(%arg0: i32, %arg1: memref<16x32xf32, #tpu.memory_space<vmem>>, %arg2: memref<4x32x8xf32, #tpu.memory_space<vmem>>, %arg3: memref<4x32x8xf32, #tpu.memory_space<vmem>>, %arg4: memref<4x32x8xf32, #tpu.memory_space<vmem>>, %arg5: memref<4x8x128xf32, #tpu.memory_space<vmem>>, %arg6: memref<1x128xf32, #tpu.memory_space<vmem>>, %arg7: memref<16x128xf32, #tpu.memory_space<vmem>>) attributes {dimension_semantics = [#tpu.dimension_semantics<arbitrary>], iteration_bounds = array<i64: 1>, scalar_prefetch = 0 : i64, scratch_operands = 0 : i64, tpu.core_type = #tpu.core_type<tc>, window_params = [{pipeline_mode = #tpu.pipeline_mode<synchronous>, transform_indices = @transform_0, window_bounds = array<i64: 16, 32>}, {pipeline_mode = #tpu.pipeline_mode<synchronous>, transform_indices = @transform_1, window_bounds = array<i64: 4, 32, 8>}, {pipeline_mode = #tpu.pipeline_mode<synchronous>, transform_indices = @transform_2, window_bounds = array<i64: 4, 32, 8>}, {pipeline_mode = #tpu.pipeline_mode<synchronous>, transform_indices = @transform_3, window_bounds = array<i64: 4, 32, 8>}, {pipeline_mode = #tpu.pipeline_mode<synchronous>, transform_indices = @transform_4, window_bounds = array<i64: 4, 8, 128>}, {pipeline_mode = #tpu.pipeline_mode<synchronous>, transform_indices = @transform_5, window_bounds = array<i64: 1, 128>}, {pipeline_mode = #tpu.pipeline_mode<synchronous>, transform_indices = @transform_6, window_bounds = array<i64: 16, 128>}]} {
    %c0 = arith.constant 0 : index
    %c0_0 = arith.constant 0 : index
    %0 = vector.load %arg1[%c0, %c0_0] : memref<16x32xf32, #tpu.memory_space<vmem>>, vector<16x32xf32>
    %cst = arith.constant 0.000000e+00 : f32
    %1 = vector.broadcast %cst : f32 to vector<8x128xf32>
    %cst_1 = arith.constant 0.000000e+00 : f32
    %2 = vector.broadcast %cst_1 : f32 to vector<8x128xf32>
    %c0_2 = arith.constant 0 : index
    %c0_3 = arith.constant 0 : index
    %c0_4 = arith.constant 0 : index
    %3 = vector.load %arg2[%c0_2, %c0_3, %c0_4] : memref<4x32x8xf32, #tpu.memory_space<vmem>>, vector<1x32x8xf32>
    %4 = vector.shape_cast %3 : vector<1x32x8xf32> to vector<32x8xf32>
    %cst_5 = arith.constant dense<0.000000e+00> : vector<16x8xf32>
    %5 = tpu.matmul %0, %4, %cst_5 {dimension_numbers = #tpu.dot_dimension_numbers<[1], [0], [0], [1], [0, 0, 1, 1], [], []>} : vector<16x32xf32>, vector<32x8xf32>, vector<16x8xf32> -> vector<16x8xf32>
    %c0_6 = arith.constant 0 : index
    %c0_7 = arith.constant 0 : index
    %c0_8 = arith.constant 0 : index
    %6 = vector.load %arg3[%c0_6, %c0_7, %c0_8] : memref<4x32x8xf32, #tpu.memory_space<vmem>>, vector<1x32x8xf32>
    %7 = vector.shape_cast %6 : vector<1x32x8xf32> to vector<32x8xf32>
    %cst_9 = arith.constant dense<0.000000e+00> : vector<16x8xf32>
    %8 = tpu.matmul %0, %7, %cst_9 {dimension_numbers = #tpu.dot_dimension_numbers<[1], [0], [0], [1], [0, 0, 1, 1], [], []>} : vector<16x32xf32>, vector<32x8xf32>, vector<16x8xf32> -> vector<16x8xf32>
    %c0_10 = arith.constant 0 : index
    %c0_11 = arith.constant 0 : index
    %c0_12 = arith.constant 0 : index
    %9 = vector.load %arg4[%c0_10, %c0_11, %c0_12] : memref<4x32x8xf32, #tpu.memory_space<vmem>>, vector<1x32x8xf32>
    %10 = vector.shape_cast %9 : vector<1x32x8xf32> to vector<32x8xf32>
    %cst_13 = arith.constant dense<0.000000e+00> : vector<16x8xf32>
    %11 = tpu.matmul %0, %10, %cst_13 {dimension_numbers = #tpu.dot_dimension_numbers<[1], [0], [0], [1], [0, 0, 1, 1], [], []>} : vector<16x32xf32>, vector<32x8xf32>, vector<16x8xf32> -> vector<16x8xf32>
    %12 = vector.extract_strided_slice %5 {offsets = [0, 0], sizes = [8, 8], strides = [1, 1]} : vector<16x8xf32> to vector<8x8xf32>
    %13 = vector.extract_strided_slice %8 {offsets = [0, 0], sizes = [8, 8], strides = [1, 1]} : vector<16x8xf32> to vector<8x8xf32>
    %14 = vector.extract_strided_slice %11 {offsets = [0, 0], sizes = [8, 8], strides = [1, 1]} : vector<16x8xf32> to vector<8x8xf32>
    %cst_14 = arith.constant dense<0.000000e+00> : vector<8x8xf32>
    %15 = tpu.matmul %12, %13, %cst_14 {dimension_numbers = #tpu.dot_dimension_numbers<[1], [1], [0], [0], [0, 0, 1, 0], [], []>} : vector<8x8xf32>, vector<8x8xf32>, vector<8x8xf32> -> vector<8x8xf32>
    %cst_15 = arith.constant 0.353553385 : f32
    %16 = vector.broadcast %cst_15 : f32 to vector<8x8xf32>
    %17 = arith.mulf %15, %16 : vector<8x8xf32>
    %cst_16 = arith.constant dense<0xFF800000> : vector<8xf32>
    %18 = vector.multi_reduction <maximumf>, %17, %cst_16 [1] : vector<8x8xf32> to vector<8xf32>
    %19 = vector.shape_cast %18 : vector<8xf32> to vector<8x1xf32>
    %20 = vector.broadcast %19 : vector<8x1xf32> to vector<8x8xf32>
    %21 = arith.subf %17, %20 : vector<8x8xf32>
    %22 = math.exp %21 : vector<8x8xf32>
    %cst_17 = arith.constant dense<0.000000e+00> : vector<8xf32>
    %23 = vector.multi_reduction <add>, %22, %cst_17 [1] : vector<8x8xf32> to vector<8xf32>
    %24 = vector.shape_cast %23 : vector<8xf32> to vector<8x1xf32>
    %25 = tpu.reciprocal %24 {approx = true} : vector<8x1xf32> -> vector<8x1xf32>
    %26 = vector.broadcast %25 : vector<8x1xf32> to vector<8x8xf32>
    %27 = arith.mulf %22, %26 : vector<8x8xf32>
    %cst_18 = arith.constant dense<0.000000e+00> : vector<8x8xf32>
    %28 = tpu.matmul %27, %14, %cst_18 {dimension_numbers = #tpu.dot_dimension_numbers<[1], [0], [0], [1], [0, 0, 1, 1], [], []>} : vector<8x8xf32>, vector<8x8xf32>, vector<8x8xf32> -> vector<8x8xf32>
    %c0_19 = arith.constant 0 : index
    %c0_20 = arith.constant 0 : index
    %c0_21 = arith.constant 0 : index
    %29 = vector.load %arg5[%c0_19, %c0_20, %c0_21] : memref<4x8x128xf32, #tpu.memory_space<vmem>>, vector<1x8x128xf32>
    %30 = vector.shape_cast %29 : vector<1x8x128xf32> to vector<8x128xf32>
    %cst_22 = arith.constant dense<0.000000e+00> : vector<8x128xf32>
    %31 = tpu.matmul %28, %30, %cst_22 {dimension_numbers = #tpu.dot_dimension_numbers<[1], [0], [0], [1], [0, 0, 1, 1], [], []>} : vector<8x8xf32>, vector<8x128xf32>, vector<8x128xf32> -> vector<8x128xf32>
    %32 = arith.addf %1, %31 : vector<8x128xf32>
    %33 = vector.extract_strided_slice %5 {offsets = [8, 0], sizes = [8, 8], strides = [1, 1]} : vector<16x8xf32> to vector<8x8xf32>
    %34 = vector.extract_strided_slice %8 {offsets = [8, 0], sizes = [8, 8], strides = [1, 1]} : vector<16x8xf32> to vector<8x8xf32>
    %35 = vector.extract_strided_slice %11 {offsets = [8, 0], sizes = [8, 8], strides = [1, 1]} : vector<16x8xf32> to vector<8x8xf32>
    %cst_23 = arith.constant dense<0.000000e+00> : vector<8x8xf32>
    %36 = tpu.matmul %33, %34, %cst_23 {dimension_numbers = #tpu.dot_dimension_numbers<[1], [1], [0], [0], [0, 0, 1, 0], [], []>} : vector<8x8xf32>, vector<8x8xf32>, vector<8x8xf32> -> vector<8x8xf32>
    %cst_24 = arith.constant 0.353553385 : f32
    %37 = vector.broadcast %cst_24 : f32 to vector<8x8xf32>
    %38 = arith.mulf %36, %37 : vector<8x8xf32>
    %cst_25 = arith.constant dense<0xFF800000> : vector<8xf32>
    %39 = vector.multi_reduction <maximumf>, %38, %cst_25 [1] : vector<8x8xf32> to vector<8xf32>
    %40 = vector.shape_cast %39 : vector<8xf32> to vector<8x1xf32>
    %41 = vector.broadcast %40 : vector<8x1xf32> to vector<8x8xf32>
    %42 = arith.subf %38, %41 : vector<8x8xf32>
    %43 = math.exp %42 : vector<8x8xf32>
    %cst_26 = arith.constant dense<0.000000e+00> : vector<8xf32>
    %44 = vector.multi_reduction <add>, %43, %cst_26 [1] : vector<8x8xf32> to vector<8xf32>
    %45 = vector.shape_cast %44 : vector<8xf32> to vector<8x1xf32>
    %46 = tpu.reciprocal %45 {approx = true} : vector<8x1xf32> -> vector<8x1xf32>
    %47 = vector.broadcast %46 : vector<8x1xf32> to vector<8x8xf32>
    %48 = arith.mulf %43, %47 : vector<8x8xf32>
    %cst_27 = arith.constant dense<0.000000e+00> : vector<8x8xf32>
    %49 = tpu.matmul %48, %35, %cst_27 {dimension_numbers = #tpu.dot_dimension_numbers<[1], [0], [0], [1], [0, 0, 1, 1], [], []>} : vector<8x8xf32>, vector<8x8xf32>, vector<8x8xf32> -> vector<8x8xf32>
    %c0_28 = arith.constant 0 : index
    %c0_29 = arith.constant 0 : index
    %c0_30 = arith.constant 0 : index
    %50 = vector.load %arg5[%c0_28, %c0_29, %c0_30] : memref<4x8x128xf32, #tpu.memory_space<vmem>>, vector<1x8x128xf32>
    %51 = vector.shape_cast %50 : vector<1x8x128xf32> to vector<8x128xf32>
    %cst_31 = arith.constant dense<0.000000e+00> : vector<8x128xf32>
    %52 = tpu.matmul %49, %51, %cst_31 {dimension_numbers = #tpu.dot_dimension_numbers<[1], [0], [0], [1], [0, 0, 1, 1], [], []>} : vector<8x8xf32>, vector<8x128xf32>, vector<8x128xf32> -> vector<8x128xf32>
    %53 = arith.addf %2, %52 : vector<8x128xf32>
    %c1 = arith.constant 1 : index
    %c0_32 = arith.constant 0 : index
    %c0_33 = arith.constant 0 : index
    %54 = vector.load %arg2[%c1, %c0_32, %c0_33] : memref<4x32x8xf32, #tpu.memory_space<vmem>>, vector<1x32x8xf32>
    %55 = vector.shape_cast %54 : vector<1x32x8xf32> to vector<32x8xf32>
    %cst_34 = arith.constant dense<0.000000e+00> : vector<16x8xf32>
    %56 = tpu.matmul %0, %55, %cst_34 {dimension_numbers = #tpu.dot_dimension_numbers<[1], [0], [0], [1], [0, 0, 1, 1], [], []>} : vector<16x32xf32>, vector<32x8xf32>, vector<16x8xf32> -> vector<16x8xf32>
    %c1_35 = arith.constant 1 : index
    %c0_36 = arith.constant 0 : index
    %c0_37 = arith.constant 0 : index
    %57 = vector.load %arg3[%c1_35, %c0_36, %c0_37] : memref<4x32x8xf32, #tpu.memory_space<vmem>>, vector<1x32x8xf32>
    %58 = vector.shape_cast %57 : vector<1x32x8xf32> to vector<32x8xf32>
    %cst_38 = arith.constant dense<0.000000e+00> : vector<16x8xf32>
    %59 = tpu.matmul %0, %58, %cst_38 {dimension_numbers = #tpu.dot_dimension_numbers<[1], [0], [0], [1], [0, 0, 1, 1], [], []>} : vector<16x32xf32>, vector<32x8xf32>, vector<16x8xf32> -> vector<16x8xf32>
    %c1_39 = arith.constant 1 : index
    %c0_40 = arith.constant 0 : index
    %c0_41 = arith.constant 0 : index
    %60 = vector.load %arg4[%c1_39, %c0_40, %c0_41] : memref<4x32x8xf32, #tpu.memory_space<vmem>>, vector<1x32x8xf32>
    %61 = vector.shape_cast %60 : vector<1x32x8xf32> to vector<32x8xf32>
    %cst_42 = arith.constant dense<0.000000e+00> : vector<16x8xf32>
    %62 = tpu.matmul %0, %61, %cst_42 {dimension_numbers = #tpu.dot_dimension_numbers<[1], [0], [0], [1], [0, 0, 1, 1], [], []>} : vector<16x32xf32>, vector<32x8xf32>, vector<16x8xf32> -> vector<16x8xf32>
    %63 = vector.extract_strided_slice %56 {offsets = [0, 0], sizes = [8, 8], strides = [1, 1]} : vector<16x8xf32> to vector<8x8xf32>
    %64 = vector.extract_strided_slice %59 {offsets = [0, 0], sizes = [8, 8], strides = [1, 1]} : vector<16x8xf32> to vector<8x8xf32>
    %65 = vector.extract_strided_slice %62 {offsets = [0, 0], sizes = [8, 8], strides = [1, 1]} : vector<16x8xf32> to vector<8x8xf32>
    %cst_43 = arith.constant dense<0.000000e+00> : vector<8x8xf32>
    %66 = tpu.matmul %63, %64, %cst_43 {dimension_numbers = #tpu.dot_dimension_numbers<[1], [1], [0], [0], [0, 0, 1, 0], [], []>} : vector<8x8xf32>, vector<8x8xf32>, vector<8x8xf32> -> vector<8x8xf32>
    %cst_44 = arith.constant 0.353553385 : f32
    %67 = vector.broadcast %cst_44 : f32 to vector<8x8xf32>
    %68 = arith.mulf %66, %67 : vector<8x8xf32>
    %cst_45 = arith.constant dense<0xFF800000> : vector<8xf32>
    %69 = vector.multi_reduction <maximumf>, %68, %cst_45 [1] : vector<8x8xf32> to vector<8xf32>
    %70 = vector.shape_cast %69 : vector<8xf32> to vector<8x1xf32>
    %71 = vector.broadcast %70 : vector<8x1xf32> to vector<8x8xf32>
    %72 = arith.subf %68, %71 : vector<8x8xf32>
    %73 = math.exp %72 : vector<8x8xf32>
    %cst_46 = arith.constant dense<0.000000e+00> : vector<8xf32>
    %74 = vector.multi_reduction <add>, %73, %cst_46 [1] : vector<8x8xf32> to vector<8xf32>
    %75 = vector.shape_cast %74 : vector<8xf32> to vector<8x1xf32>
    %76 = tpu.reciprocal %75 {approx = true} : vector<8x1xf32> -> vector<8x1xf32>
    %77 = vector.broadcast %76 : vector<8x1xf32> to vector<8x8xf32>
    %78 = arith.mulf %73, %77 : vector<8x8xf32>
    %cst_47 = arith.constant dense<0.000000e+00> : vector<8x8xf32>
    %79 = tpu.matmul %78, %65, %cst_47 {dimension_numbers = #tpu.dot_dimension_numbers<[1], [0], [0], [1], [0, 0, 1, 1], [], []>} : vector<8x8xf32>, vector<8x8xf32>, vector<8x8xf32> -> vector<8x8xf32>
    %c1_48 = arith.constant 1 : index
    %c0_49 = arith.constant 0 : index
    %c0_50 = arith.constant 0 : index
    %80 = vector.load %arg5[%c1_48, %c0_49, %c0_50] : memref<4x8x128xf32, #tpu.memory_space<vmem>>, vector<1x8x128xf32>
    %81 = vector.shape_cast %80 : vector<1x8x128xf32> to vector<8x128xf32>
    %cst_51 = arith.constant dense<0.000000e+00> : vector<8x128xf32>
    %82 = tpu.matmul %79, %81, %cst_51 {dimension_numbers = #tpu.dot_dimension_numbers<[1], [0], [0], [1], [0, 0, 1, 1], [], []>} : vector<8x8xf32>, vector<8x128xf32>, vector<8x128xf32> -> vector<8x128xf32>
    %83 = arith.addf %32, %82 : vector<8x128xf32>
    %84 = vector.extract_strided_slice %56 {offsets = [8, 0], sizes = [8, 8], strides = [1, 1]} : vector<16x8xf32> to vector<8x8xf32>
    %85 = vector.extract_strided_slice %59 {offsets = [8, 0], sizes = [8, 8], strides = [1, 1]} : vector<16x8xf32> to vector<8x8xf32>
    %86 = vector.extract_strided_slice %62 {offsets = [8, 0], sizes = [8, 8], strides = [1, 1]} : vector<16x8xf32> to vector<8x8xf32>
    %cst_52 = arith.constant dense<0.000000e+00> : vector<8x8xf32>
    %87 = tpu.matmul %84, %85, %cst_52 {dimension_numbers = #tpu.dot_dimension_numbers<[1], [1], [0], [0], [0, 0, 1, 0], [], []>} : vector<8x8xf32>, vector<8x8xf32>, vector<8x8xf32> -> vector<8x8xf32>
    %cst_53 = arith.constant 0.353553385 : f32
    %88 = vector.broadcast %cst_53 : f32 to vector<8x8xf32>
    %89 = arith.mulf %87, %88 : vector<8x8xf32>
    %cst_54 = arith.constant dense<0xFF800000> : vector<8xf32>
    %90 = vector.multi_reduction <maximumf>, %89, %cst_54 [1] : vector<8x8xf32> to vector<8xf32>
    %91 = vector.shape_cast %90 : vector<8xf32> to vector<8x1xf32>
    %92 = vector.broadcast %91 : vector<8x1xf32> to vector<8x8xf32>
    %93 = arith.subf %89, %92 : vector<8x8xf32>
    %94 = math.exp %93 : vector<8x8xf32>
    %cst_55 = arith.constant dense<0.000000e+00> : vector<8xf32>
    %95 = vector.multi_reduction <add>, %94, %cst_55 [1] : vector<8x8xf32> to vector<8xf32>
    %96 = vector.shape_cast %95 : vector<8xf32> to vector<8x1xf32>
    %97 = tpu.reciprocal %96 {approx = true} : vector<8x1xf32> -> vector<8x1xf32>
    %98 = vector.broadcast %97 : vector<8x1xf32> to vector<8x8xf32>
    %99 = arith.mulf %94, %98 : vector<8x8xf32>
    %cst_56 = arith.constant dense<0.000000e+00> : vector<8x8xf32>
    %100 = tpu.matmul %99, %86, %cst_56 {dimension_numbers = #tpu.dot_dimension_numbers<[1], [0], [0], [1], [0, 0, 1, 1], [], []>} : vector<8x8xf32>, vector<8x8xf32>, vector<8x8xf32> -> vector<8x8xf32>
    %c1_57 = arith.constant 1 : index
    %c0_58 = arith.constant 0 : index
    %c0_59 = arith.constant 0 : index
    %101 = vector.load %arg5[%c1_57, %c0_58, %c0_59] : memref<4x8x128xf32, #tpu.memory_space<vmem>>, vector<1x8x128xf32>
    %102 = vector.shape_cast %101 : vector<1x8x128xf32> to vector<8x128xf32>
    %cst_60 = arith.constant dense<0.000000e+00> : vector<8x128xf32>
    %103 = tpu.matmul %100, %102, %cst_60 {dimension_numbers = #tpu.dot_dimension_numbers<[1], [0], [0], [1], [0, 0, 1, 1], [], []>} : vector<8x8xf32>, vector<8x128xf32>, vector<8x128xf32> -> vector<8x128xf32>
    %104 = arith.addf %53, %103 : vector<8x128xf32>
    %c2 = arith.constant 2 : index
    %c0_61 = arith.constant 0 : index
    %c0_62 = arith.constant 0 : index
    %105 = vector.load %arg2[%c2, %c0_61, %c0_62] : memref<4x32x8xf32, #tpu.memory_space<vmem>>, vector<1x32x8xf32>
    %106 = vector.shape_cast %105 : vector<1x32x8xf32> to vector<32x8xf32>
    %cst_63 = arith.constant dense<0.000000e+00> : vector<16x8xf32>
    %107 = tpu.matmul %0, %106, %cst_63 {dimension_numbers = #tpu.dot_dimension_numbers<[1], [0], [0], [1], [0, 0, 1, 1], [], []>} : vector<16x32xf32>, vector<32x8xf32>, vector<16x8xf32> -> vector<16x8xf32>
    %c2_64 = arith.constant 2 : index
    %c0_65 = arith.constant 0 : index
    %c0_66 = arith.constant 0 : index
    %108 = vector.load %arg3[%c2_64, %c0_65, %c0_66] : memref<4x32x8xf32, #tpu.memory_space<vmem>>, vector<1x32x8xf32>
    %109 = vector.shape_cast %108 : vector<1x32x8xf32> to vector<32x8xf32>
    %cst_67 = arith.constant dense<0.000000e+00> : vector<16x8xf32>
    %110 = tpu.matmul %0, %109, %cst_67 {dimension_numbers = #tpu.dot_dimension_numbers<[1], [0], [0], [1], [0, 0, 1, 1], [], []>} : vector<16x32xf32>, vector<32x8xf32>, vector<16x8xf32> -> vector<16x8xf32>
    %c2_68 = arith.constant 2 : index
    %c0_69 = arith.constant 0 : index
    %c0_70 = arith.constant 0 : index
    %111 = vector.load %arg4[%c2_68, %c0_69, %c0_70] : memref<4x32x8xf32, #tpu.memory_space<vmem>>, vector<1x32x8xf32>
    %112 = vector.shape_cast %111 : vector<1x32x8xf32> to vector<32x8xf32>
    %cst_71 = arith.constant dense<0.000000e+00> : vector<16x8xf32>
    %113 = tpu.matmul %0, %112, %cst_71 {dimension_numbers = #tpu.dot_dimension_numbers<[1], [0], [0], [1], [0, 0, 1, 1], [], []>} : vector<16x32xf32>, vector<32x8xf32>, vector<16x8xf32> -> vector<16x8xf32>
    %114 = vector.extract_strided_slice %107 {offsets = [0, 0], sizes = [8, 8], strides = [1, 1]} : vector<16x8xf32> to vector<8x8xf32>
    %115 = vector.extract_strided_slice %110 {offsets = [0, 0], sizes = [8, 8], strides = [1, 1]} : vector<16x8xf32> to vector<8x8xf32>
    %116 = vector.extract_strided_slice %113 {offsets = [0, 0], sizes = [8, 8], strides = [1, 1]} : vector<16x8xf32> to vector<8x8xf32>
    %cst_72 = arith.constant dense<0.000000e+00> : vector<8x8xf32>
    %117 = tpu.matmul %114, %115, %cst_72 {dimension_numbers = #tpu.dot_dimension_numbers<[1], [1], [0], [0], [0, 0, 1, 0], [], []>} : vector<8x8xf32>, vector<8x8xf32>, vector<8x8xf32> -> vector<8x8xf32>
    %cst_73 = arith.constant 0.353553385 : f32
    %118 = vector.broadcast %cst_73 : f32 to vector<8x8xf32>
    %119 = arith.mulf %117, %118 : vector<8x8xf32>
    %cst_74 = arith.constant dense<0xFF800000> : vector<8xf32>
    %120 = vector.multi_reduction <maximumf>, %119, %cst_74 [1] : vector<8x8xf32> to vector<8xf32>
    %121 = vector.shape_cast %120 : vector<8xf32> to vector<8x1xf32>
    %122 = vector.broadcast %121 : vector<8x1xf32> to vector<8x8xf32>
    %123 = arith.subf %119, %122 : vector<8x8xf32>
    %124 = math.exp %123 : vector<8x8xf32>
    %cst_75 = arith.constant dense<0.000000e+00> : vector<8xf32>
    %125 = vector.multi_reduction <add>, %124, %cst_75 [1] : vector<8x8xf32> to vector<8xf32>
    %126 = vector.shape_cast %125 : vector<8xf32> to vector<8x1xf32>
    %127 = tpu.reciprocal %126 {approx = true} : vector<8x1xf32> -> vector<8x1xf32>
    %128 = vector.broadcast %127 : vector<8x1xf32> to vector<8x8xf32>
    %129 = arith.mulf %124, %128 : vector<8x8xf32>
    %cst_76 = arith.constant dense<0.000000e+00> : vector<8x8xf32>
    %130 = tpu.matmul %129, %116, %cst_76 {dimension_numbers = #tpu.dot_dimension_numbers<[1], [0], [0], [1], [0, 0, 1, 1], [], []>} : vector<8x8xf32>, vector<8x8xf32>, vector<8x8xf32> -> vector<8x8xf32>
    %c2_77 = arith.constant 2 : index
    %c0_78 = arith.constant 0 : index
    %c0_79 = arith.constant 0 : index
    %131 = vector.load %arg5[%c2_77, %c0_78, %c0_79] : memref<4x8x128xf32, #tpu.memory_space<vmem>>, vector<1x8x128xf32>
    %132 = vector.shape_cast %131 : vector<1x8x128xf32> to vector<8x128xf32>
    %cst_80 = arith.constant dense<0.000000e+00> : vector<8x128xf32>
    %133 = tpu.matmul %130, %132, %cst_80 {dimension_numbers = #tpu.dot_dimension_numbers<[1], [0], [0], [1], [0, 0, 1, 1], [], []>} : vector<8x8xf32>, vector<8x128xf32>, vector<8x128xf32> -> vector<8x128xf32>
    %134 = arith.addf %83, %133 : vector<8x128xf32>
    %135 = vector.extract_strided_slice %107 {offsets = [8, 0], sizes = [8, 8], strides = [1, 1]} : vector<16x8xf32> to vector<8x8xf32>
    %136 = vector.extract_strided_slice %110 {offsets = [8, 0], sizes = [8, 8], strides = [1, 1]} : vector<16x8xf32> to vector<8x8xf32>
    %137 = vector.extract_strided_slice %113 {offsets = [8, 0], sizes = [8, 8], strides = [1, 1]} : vector<16x8xf32> to vector<8x8xf32>
    %cst_81 = arith.constant dense<0.000000e+00> : vector<8x8xf32>
    %138 = tpu.matmul %135, %136, %cst_81 {dimension_numbers = #tpu.dot_dimension_numbers<[1], [1], [0], [0], [0, 0, 1, 0], [], []>} : vector<8x8xf32>, vector<8x8xf32>, vector<8x8xf32> -> vector<8x8xf32>
    %cst_82 = arith.constant 0.353553385 : f32
    %139 = vector.broadcast %cst_82 : f32 to vector<8x8xf32>
    %140 = arith.mulf %138, %139 : vector<8x8xf32>
    %cst_83 = arith.constant dense<0xFF800000> : vector<8xf32>
    %141 = vector.multi_reduction <maximumf>, %140, %cst_83 [1] : vector<8x8xf32> to vector<8xf32>
    %142 = vector.shape_cast %141 : vector<8xf32> to vector<8x1xf32>
    %143 = vector.broadcast %142 : vector<8x1xf32> to vector<8x8xf32>
    %144 = arith.subf %140, %143 : vector<8x8xf32>
    %145 = math.exp %144 : vector<8x8xf32>
    %cst_84 = arith.constant dense<0.000000e+00> : vector<8xf32>
    %146 = vector.multi_reduction <add>, %145, %cst_84 [1] : vector<8x8xf32> to vector<8xf32>
    %147 = vector.shape_cast %146 : vector<8xf32> to vector<8x1xf32>
    %148 = tpu.reciprocal %147 {approx = true} : vector<8x1xf32> -> vector<8x1xf32>
    %149 = vector.broadcast %148 : vector<8x1xf32> to vector<8x8xf32>
    %150 = arith.mulf %145, %149 : vector<8x8xf32>
    %cst_85 = arith.constant dense<0.000000e+00> : vector<8x8xf32>
    %151 = tpu.matmul %150, %137, %cst_85 {dimension_numbers = #tpu.dot_dimension_numbers<[1], [0], [0], [1], [0, 0, 1, 1], [], []>} : vector<8x8xf32>, vector<8x8xf32>, vector<8x8xf32> -> vector<8x8xf32>
    %c2_86 = arith.constant 2 : index
    %c0_87 = arith.constant 0 : index
    %c0_88 = arith.constant 0 : index
    %152 = vector.load %arg5[%c2_86, %c0_87, %c0_88] : memref<4x8x128xf32, #tpu.memory_space<vmem>>, vector<1x8x128xf32>
    %153 = vector.shape_cast %152 : vector<1x8x128xf32> to vector<8x128xf32>
    %cst_89 = arith.constant dense<0.000000e+00> : vector<8x128xf32>
    %154 = tpu.matmul %151, %153, %cst_89 {dimension_numbers = #tpu.dot_dimension_numbers<[1], [0], [0], [1], [0, 0, 1, 1], [], []>} : vector<8x8xf32>, vector<8x128xf32>, vector<8x128xf32> -> vector<8x128xf32>
    %155 = arith.addf %104, %154 : vector<8x128xf32>
    %c3 = arith.constant 3 : index
    %c0_90 = arith.constant 0 : index
    %c0_91 = arith.constant 0 : index
    %156 = vector.load %arg2[%c3, %c0_90, %c0_91] : memref<4x32x8xf32, #tpu.memory_space<vmem>>, vector<1x32x8xf32>
    %157 = vector.shape_cast %156 : vector<1x32x8xf32> to vector<32x8xf32>
    %cst_92 = arith.constant dense<0.000000e+00> : vector<16x8xf32>
    %158 = tpu.matmul %0, %157, %cst_92 {dimension_numbers = #tpu.dot_dimension_numbers<[1], [0], [0], [1], [0, 0, 1, 1], [], []>} : vector<16x32xf32>, vector<32x8xf32>, vector<16x8xf32> -> vector<16x8xf32>
    %c3_93 = arith.constant 3 : index
    %c0_94 = arith.constant 0 : index
    %c0_95 = arith.constant 0 : index
    %159 = vector.load %arg3[%c3_93, %c0_94, %c0_95] : memref<4x32x8xf32, #tpu.memory_space<vmem>>, vector<1x32x8xf32>
    %160 = vector.shape_cast %159 : vector<1x32x8xf32> to vector<32x8xf32>
    %cst_96 = arith.constant dense<0.000000e+00> : vector<16x8xf32>
    %161 = tpu.matmul %0, %160, %cst_96 {dimension_numbers = #tpu.dot_dimension_numbers<[1], [0], [0], [1], [0, 0, 1, 1], [], []>} : vector<16x32xf32>, vector<32x8xf32>, vector<16x8xf32> -> vector<16x8xf32>
    %c3_97 = arith.constant 3 : index
    %c0_98 = arith.constant 0 : index
    %c0_99 = arith.constant 0 : index
    %162 = vector.load %arg4[%c3_97, %c0_98, %c0_99] : memref<4x32x8xf32, #tpu.memory_space<vmem>>, vector<1x32x8xf32>
    %163 = vector.shape_cast %162 : vector<1x32x8xf32> to vector<32x8xf32>
    %cst_100 = arith.constant dense<0.000000e+00> : vector<16x8xf32>
    %164 = tpu.matmul %0, %163, %cst_100 {dimension_numbers = #tpu.dot_dimension_numbers<[1], [0], [0], [1], [0, 0, 1, 1], [], []>} : vector<16x32xf32>, vector<32x8xf32>, vector<16x8xf32> -> vector<16x8xf32>
    %165 = vector.extract_strided_slice %158 {offsets = [0, 0], sizes = [8, 8], strides = [1, 1]} : vector<16x8xf32> to vector<8x8xf32>
    %166 = vector.extract_strided_slice %161 {offsets = [0, 0], sizes = [8, 8], strides = [1, 1]} : vector<16x8xf32> to vector<8x8xf32>
    %167 = vector.extract_strided_slice %164 {offsets = [0, 0], sizes = [8, 8], strides = [1, 1]} : vector<16x8xf32> to vector<8x8xf32>
    %cst_101 = arith.constant dense<0.000000e+00> : vector<8x8xf32>
    %168 = tpu.matmul %165, %166, %cst_101 {dimension_numbers = #tpu.dot_dimension_numbers<[1], [1], [0], [0], [0, 0, 1, 0], [], []>} : vector<8x8xf32>, vector<8x8xf32>, vector<8x8xf32> -> vector<8x8xf32>
    %cst_102 = arith.constant 0.353553385 : f32
    %169 = vector.broadcast %cst_102 : f32 to vector<8x8xf32>
    %170 = arith.mulf %168, %169 : vector<8x8xf32>
    %cst_103 = arith.constant dense<0xFF800000> : vector<8xf32>
    %171 = vector.multi_reduction <maximumf>, %170, %cst_103 [1] : vector<8x8xf32> to vector<8xf32>
    %172 = vector.shape_cast %171 : vector<8xf32> to vector<8x1xf32>
    %173 = vector.broadcast %172 : vector<8x1xf32> to vector<8x8xf32>
    %174 = arith.subf %170, %173 : vector<8x8xf32>
    %175 = math.exp %174 : vector<8x8xf32>
    %cst_104 = arith.constant dense<0.000000e+00> : vector<8xf32>
    %176 = vector.multi_reduction <add>, %175, %cst_104 [1] : vector<8x8xf32> to vector<8xf32>
    %177 = vector.shape_cast %176 : vector<8xf32> to vector<8x1xf32>
    %178 = tpu.reciprocal %177 {approx = true} : vector<8x1xf32> -> vector<8x1xf32>
    %179 = vector.broadcast %178 : vector<8x1xf32> to vector<8x8xf32>
    %180 = arith.mulf %175, %179 : vector<8x8xf32>
    %cst_105 = arith.constant dense<0.000000e+00> : vector<8x8xf32>
    %181 = tpu.matmul %180, %167, %cst_105 {dimension_numbers = #tpu.dot_dimension_numbers<[1], [0], [0], [1], [0, 0, 1, 1], [], []>} : vector<8x8xf32>, vector<8x8xf32>, vector<8x8xf32> -> vector<8x8xf32>
    %c3_106 = arith.constant 3 : index
    %c0_107 = arith.constant 0 : index
    %c0_108 = arith.constant 0 : index
    %182 = vector.load %arg5[%c3_106, %c0_107, %c0_108] : memref<4x8x128xf32, #tpu.memory_space<vmem>>, vector<1x8x128xf32>
    %183 = vector.shape_cast %182 : vector<1x8x128xf32> to vector<8x128xf32>
    %cst_109 = arith.constant dense<0.000000e+00> : vector<8x128xf32>
    %184 = tpu.matmul %181, %183, %cst_109 {dimension_numbers = #tpu.dot_dimension_numbers<[1], [0], [0], [1], [0, 0, 1, 1], [], []>} : vector<8x8xf32>, vector<8x128xf32>, vector<8x128xf32> -> vector<8x128xf32>
    %185 = arith.addf %134, %184 : vector<8x128xf32>
    %186 = vector.extract_strided_slice %158 {offsets = [8, 0], sizes = [8, 8], strides = [1, 1]} : vector<16x8xf32> to vector<8x8xf32>
    %187 = vector.extract_strided_slice %161 {offsets = [8, 0], sizes = [8, 8], strides = [1, 1]} : vector<16x8xf32> to vector<8x8xf32>
    %188 = vector.extract_strided_slice %164 {offsets = [8, 0], sizes = [8, 8], strides = [1, 1]} : vector<16x8xf32> to vector<8x8xf32>
    %cst_110 = arith.constant dense<0.000000e+00> : vector<8x8xf32>
    %189 = tpu.matmul %186, %187, %cst_110 {dimension_numbers = #tpu.dot_dimension_numbers<[1], [1], [0], [0], [0, 0, 1, 0], [], []>} : vector<8x8xf32>, vector<8x8xf32>, vector<8x8xf32> -> vector<8x8xf32>
    %cst_111 = arith.constant 0.353553385 : f32
    %190 = vector.broadcast %cst_111 : f32 to vector<8x8xf32>
    %191 = arith.mulf %189, %190 : vector<8x8xf32>
    %cst_112 = arith.constant dense<0xFF800000> : vector<8xf32>
    %192 = vector.multi_reduction <maximumf>, %191, %cst_112 [1] : vector<8x8xf32> to vector<8xf32>
    %193 = vector.shape_cast %192 : vector<8xf32> to vector<8x1xf32>
    %194 = vector.broadcast %193 : vector<8x1xf32> to vector<8x8xf32>
    %195 = arith.subf %191, %194 : vector<8x8xf32>
    %196 = math.exp %195 : vector<8x8xf32>
    %cst_113 = arith.constant dense<0.000000e+00> : vector<8xf32>
    %197 = vector.multi_reduction <add>, %196, %cst_113 [1] : vector<8x8xf32> to vector<8xf32>
    %198 = vector.shape_cast %197 : vector<8xf32> to vector<8x1xf32>
    %199 = tpu.reciprocal %198 {approx = true} : vector<8x1xf32> -> vector<8x1xf32>
    %200 = vector.broadcast %199 : vector<8x1xf32> to vector<8x8xf32>
    %201 = arith.mulf %196, %200 : vector<8x8xf32>
    %cst_114 = arith.constant dense<0.000000e+00> : vector<8x8xf32>
    %202 = tpu.matmul %201, %188, %cst_114 {dimension_numbers = #tpu.dot_dimension_numbers<[1], [0], [0], [1], [0, 0, 1, 1], [], []>} : vector<8x8xf32>, vector<8x8xf32>, vector<8x8xf32> -> vector<8x8xf32>
    %c3_115 = arith.constant 3 : index
    %c0_116 = arith.constant 0 : index
    %c0_117 = arith.constant 0 : index
    %203 = vector.load %arg5[%c3_115, %c0_116, %c0_117] : memref<4x8x128xf32, #tpu.memory_space<vmem>>, vector<1x8x128xf32>
    %204 = vector.shape_cast %203 : vector<1x8x128xf32> to vector<8x128xf32>
    %cst_118 = arith.constant dense<0.000000e+00> : vector<8x128xf32>
    %205 = tpu.matmul %202, %204, %cst_118 {dimension_numbers = #tpu.dot_dimension_numbers<[1], [0], [0], [1], [0, 0, 1, 1], [], []>} : vector<8x8xf32>, vector<8x128xf32>, vector<8x128xf32> -> vector<8x128xf32>
    %206 = arith.addf %155, %205 : vector<8x128xf32>
    %c0_119 = arith.constant 0 : index
    %c0_120 = arith.constant 0 : index
    %207 = vector.load %arg6[%c0_119, %c0_120] : memref<1x128xf32, #tpu.memory_space<vmem>>, vector<1x128xf32>
    %208 = vector.broadcast %207 : vector<1x128xf32> to vector<8x128xf32>
    %209 = arith.addf %185, %208 : vector<8x128xf32>
    %c0_121 = arith.constant 0 : index
    %c0_122 = arith.constant 0 : index
    %210 = vector.load %arg7[%c0_121, %c0_122] : memref<16x128xf32, #tpu.memory_space<vmem>>, vector<8x128xf32>
    tpu.vector_store %arg7[%c0_121, %c0_122], %209 {strides = array<i32>} : memref<16x128xf32, #tpu.memory_space<vmem>>, vector<8x128xf32>,
    %211 = vector.broadcast %207 : vector<1x128xf32> to vector<8x128xf32>
    %212 = arith.addf %206, %211 : vector<8x128xf32>
    %c8 = arith.constant 8 : index
    %c0_123 = arith.constant 0 : index
    %213 = vector.load %arg7[%c8, %c0_123] : memref<16x128xf32, #tpu.memory_space<vmem>>, vector<8x128xf32>
    tpu.vector_store %arg7[%c8, %c0_123], %212 {strides = array<i32>} : memref<16x128xf32, #tpu.memory_space<vmem>>, vector<8x128xf32>,
    return
  }
  func.func @transform_0(%arg0: i32) -> (i32, i32) {
    %c0_i32 = arith.constant 0 : i32
    %c0_i32_0 = arith.constant 0 : i32
    %c0_i32_1 = arith.constant 0 : i32
    return %c0_i32, %c0_i32_0 : i32, i32
  }
  func.func @transform_1(%arg0: i32) -> (i32, i32, i32) {
    %c0_i32 = arith.constant 0 : i32
    %c0_i32_0 = arith.constant 0 : i32
    %c0_i32_1 = arith.constant 0 : i32
    %c0_i32_2 = arith.constant 0 : i32
    return %c0_i32, %c0_i32_0, %c0_i32_1 : i32, i32, i32
  }
  func.func @transform_2(%arg0: i32) -> (i32, i32, i32) {
    %c0_i32 = arith.constant 0 : i32
    %c0_i32_0 = arith.constant 0 : i32
    %c0_i32_1 = arith.constant 0 : i32
    %c0_i32_2 = arith.constant 0 : i32
    return %c0_i32, %c0_i32_0, %c0_i32_1 : i32, i32, i32
  }
  func.func @transform_3(%arg0: i32) -> (i32, i32, i32) {
    %c0_i32 = arith.constant 0 : i32
    %c0_i32_0 = arith.constant 0 : i32
    %c0_i32_1 = arith.constant 0 : i32
    %c0_i32_2 = arith.constant 0 : i32
    return %c0_i32, %c0_i32_0, %c0_i32_1 : i32, i32, i32
  }
  func.func @transform_4(%arg0: i32) -> (i32, i32, i32) {
    %c0_i32 = arith.constant 0 : i32
    %c0_i32_0 = arith.constant 0 : i32
    %c0_i32_1 = arith.constant 0 : i32
    %c0_i32_2 = arith.constant 0 : i32
    return %c0_i32, %c0_i32_0, %c0_i32_1 : i32, i32, i32
  }
  func.func @transform_5(%arg0: i32) -> (i32, i32) {
    %c0_i32 = arith.constant 0 : i32
    %c0_i32_0 = arith.constant 0 : i32
    %c0_i32_1 = arith.constant 0 : i32
    return %c0_i32, %c0_i32_0 : i32, i32
  }
  func.func @transform_6(%arg0: i32) -> (i32, i32) {
    %c0_i32 = arith.constant 0 : i32
    %c0_i32_0 = arith.constant 0 : i32
    %c0_i32_1 = arith.constant 0 : i32
    return %c0_i32, %c0_i32_0 : i32, i32
  }
}

</mosaic_0001>

<bundles_post_ra>
// kernel: tpu_custom_call.1
= control target key start
LH: loop header
LB: loop body
LE: loop exit
PB: predicated region body
PF: predicated region fallthrough
CT: control target
= control target key end

     0   :  { %vm30_vm0 = vcmask 261120   ;;  %s3933_s0 = inlined_call_operand.vmem [shape: f32[16,32], index: 0, kind: input, shape index: {}]   ;;  %s3934_s1 = inlined_call_operand.vmem [shape: f32[4,32,8], index: 1, kind: input, shape index: {}]   ;;  %s3935_s2 = inlined_call_operand.vmem [shape: f32[4,32,8], index: 2, kind: input, shape index: {}]   ;;  %s3936_s3 = inlined_call_operand.vmem [shape: f32[4,32,8], index: 3, kind: input, shape index: {}]   ;;  %s3937_s4 = inlined_call_operand.vmem [shape: f32[4,8,128], index: 4, kind: input, shape index: {}]   ;;  %s3938_s5 = inlined_call_operand.vmem [shape: f32[1,128], index: 5, kind: input, shape index: {}]   ;;  %s3939_s6 = inlined_call_operand.hbm [shape: f32[16,128], index: 6, kind: output, shape index: {}]  }
   0x1   :  { %v112_v0 = vld [vmem:[%s3935_s2] sm:$0xff]  ;;  %v113_v1 = vld [vmem:[%s3935_s2 + $0x8] sm:$0xff]  ;;  %v114_v5 = vld [vmem:[%s3935_s2 + $0x10] sm:$0xff] }
   0x2   :  { %v26_v2 = vld [vmem:[%s3934_s1] sm:$0xff]  ;;  %v3377_v3 = vpack.c.bf16 %v113_v1, %v112_v0  ;;  %v27_v4 = vld [vmem:[%s3934_s1 + $0x8] sm:$0xff]  ;;  %v115_v6 = vld [vmem:[%s3935_s2 + $0x18] sm:$0xff] }
   0x3   :  { %v3369_v7 = vpack.c.bf16 %v27_v4, %v26_v2  ;;  %v3381_v8 = vpack.c.bf16 %v115_v6, %v114_v5  ;;  %v28_v9 = vld [vmem:[%s3934_s1 + $0x10] sm:$0xff]  ;;  %v29_v10 = vld [vmem:[%s3934_s1 + $0x18] sm:$0xff]  ;;  %v3593_v11 = vld [vmem:[%s3933_s0] sm:$0xff] }
   0x4   :  { %3378 = vmatprep.subr.bf16.mxu1 %v3377_v3  ;;  %v3373_v12 = vpack.c.bf16 %v29_v10, %v28_v9  ;;  %3136 = vmatprep.mubr.msk.f32.mxu1 %vm30_vm0, %v3593_v11  ;;  %v191_v13 = vld [vmem:[%s3936_s3] sm:$0xff]  ;;  %v192_v14 = vld [vmem:[%s3936_s3 + $0x8] sm:$0xff] }
   0x5   :  { %3380 = vmatpush3.bf16.msra.mxu1 %v3377_v3  ;;  %3370 = vmatprep.subr.bf16.mxu0 %v3369_v7 }
   0x6   :  { %11 = vsyncpa [#allocation3], 0  ;;  %3372 = vmatpush3.bf16.msra.mxu0 %v3369_v7  ;;  %3382 = vmatprep.subr.bf16.mxu1 %v3381_v8  ;;  %v3385_v15 = vpack.c.bf16 %v192_v14, %v191_v13  ;;  %v193_v16 = vld [vmem:[%s3936_s3 + $0x10] sm:$0xff]  ;;  %v194_v17 = vld [vmem:[%s3936_s3 + $0x18] sm:$0xff]  ;;  %v3526_v20 = vmov 0.0   ;;  %vm3527_vm1 = vmmov 0  }
   0x7   :  { %3374 = vmatprep.subr.bf16.mxu0 %v3373_v12  ;;  %3125 = vmatprep.mubr.msk.f32.mxu0 %vm30_vm0, %v3593_v11  ;;  %v3614_v18 = vld [vmem:[%s3933_s0 + $0x8] sm:$0xff]  ;;  %v3389_v19 = vpack.c.bf16 %v194_v17, %v193_v16  ;;  %vm270_vm2 = vcmask 64512   ;;  %v2913_v45 = vld [vmem:[%s3934_s1 + $0x20] sm:$0xff]  ;;  %v2915_v48 = vld [vmem:[%s3934_s1 + $0x30] sm:$0xff]  ;;  %s3528_s27 = smov [#allocation2]  }
   0x8   :  { %v2914_v46 = vld [vmem:[%s3934_s1 + $0x28] sm:$0xff]  ;;  %v2916_v49 = vld [vmem:[%s3934_s1 + $0x38] sm:$0xff]  ;;  %v2919_v53 = vld [vmem:[%s3935_s2 + $0x20] sm:$0xff]  ;;  %s2890_s28 = sshll.u32 %s3528_s27, 4  ;;  %s2891_s28 = int_to_ptr.vmem [resolvable:$true] %s2890_s28 }
   0x9   :  { %3384 = vmatpush3.bf16.msra.mxu1 %v3381_v8  ;;  %v3393_v47 = vpack.c.bf16 %v2914_v46, %v2913_v45  ;;  %v3397_v50 = vpack.c.bf16 %v2916_v49, %v2915_v48  ;;  %v2920_v54 = vld [vmem:[%s3935_s2 + $0x28] sm:$0xff]  ;;  %v2921_v58 = vld [vmem:[%s3935_s2 + $0x30] sm:$0xff]  ;;  %v2922_v59 = vld [vmem:[%s3935_s2 + $0x38] sm:$0xff]  ;;  %p3507_p1 = scmp.lt.s32.totalorder %s2891_s28, %s2891_s28 }
   0xa   :  { %3376 = vmatpush3.bf16.msra.mxu0 %v3373_v12  ;;  %3150 = vmatprep.subr.mxu1 %v3526_v20  ;;  %v3401_v57 = vpack.c.bf16 %v2920_v54, %v2919_v53  ;;  %v3405_v62 = vpack.c.bf16 %v2922_v59, %v2921_v58  ;;  %v2925_v7 = vld [vmem:[%s3936_s3 + $0x20] sm:$0xff]  ;;  %v2926_v8 = vld [vmem:[%s3936_s3 + $0x28] sm:$0xff]  ;;  %v2927_v9 = vld [vmem:[%s3936_s3 + $0x30] sm:$0xff] }
   0xb   :  { %3386 = vmatprep.subr.bf16.mxu0 %v3385_v15  ;;  %v3409_v10 = vpack.c.bf16 %v2926_v8, %v2925_v7  ;;  %v2928_v12 = vld [vmem:[%s3936_s3 + $0x38] sm:$0xff]  ;;  %v2948_v49 = vld [vmem:[%s3935_s2 + $0x40] sm:$0xff] }
   0xc   :  { %3137 = vmatmul.mubr.msk.f32.vlgmr.msra.gmra.mrb[0].mxu1 %vm30_vm0, %v3614_v18  ;;  %v3413_v13 = vpack.c.bf16 %v2928_v12, %v2927_v9  ;;  %v2942_v54 = vld [vmem:[%s3934_s1 + $0x40] sm:$0xff]  ;;  %v2951_v58 = vld [vmem:[%s3935_s2 + $0x58] sm:$0xff]  ;;  %v2955_v12 = vld [vmem:[%s3936_s3 + $0x48] sm:$0xff] }
   0xd   :  { %3126 = vmatmul.mubr.msk.f32.vlgmr.msra.gmra.mrb[0].mxu0 %vm30_vm0, %v3614_v18  ;;  %3152 = vmatprep.mubr.msk.f32.mxu1 %vm3527_vm1, %v3526_v20 }
   0xe   :  { %3388 = vmatpush3.bf16.msra.mxu0 %v3385_v15  ;;  %3147 = vmatprep.mubr.msk.f32.mxu0 %vm30_vm0, %v3593_v11 }
   0xf   :  { %3390 = vmatprep.subr.bf16.mxu0 %v3389_v19 }
  0x12   :  { %3392 = vmatpush3.bf16.msra.mxu0 %v3389_v19 }
  0x13   :  { %3160 = vmatprep.subr.mxu0 %v3526_v20 }
  0x15   :  { %3148 = vmatmul.mubr.msk.f32.vlgmr.msra.gmra.mrb[2].mxu0 %vm30_vm0, %v3614_v18 }
  0x16   :  { %3162 = vmatprep.mubr.msk.f32.mxu0 %vm3527_vm1, %v3526_v20 }
  0xdf   :  { %v3138_v21 = vpop.f32.mrb[0].mxu1 }
  0xe0   :  { %v182_v22 = vpop.f32.mrb[1].mxu1  ;;  %3161 = vmatpush3.xpose.msk.msra.mxu0 %vm270_vm2, %v3138_v21  ;;  %v3127_v23 = vpop.f32.mrb[0].mxu0 }
  0xe1   :  { %3151 = vmatpush3.xpose.msk.msra.mxu1 %vm270_vm2, %v182_v22  ;;  %v103_v24 = vpop.f32.mrb[1].mxu0  ;;  %3394 = vmatprep.subr.bf16.mxu0 %v3393_v47 }
  0xe2   :  { %3155 = vmatprep.subr.mxu1 %v3526_v20 }
  0xe3   :  { %3163 = vmatmul.mubr.msk.f32.vlgmr.msra.gmra.mrb[4].mxu0 %vm270_vm2, %v3127_v23 }
  0xe4   :  { %3153 = vmatmul.mubr.msk.f32.vlgmr.msra.gmra.mrb[2].mxu1 %vm270_vm2, %v103_v24  ;;  %3178 = vmatprep.mubr.msk.f32.mxu0 %vm30_vm0, %v3593_v11 }
  0xe5   :  { %3157 = vmatprep.mubr.msk.f32.mxu1 %vm3527_vm1, %v3526_v20  ;;  %3396 = vmatpush3.bf16.msra.mxu0 %v3393_v47 }
  0xe6   :  { %3398 = vmatprep.subr.bf16.mxu0 %v3397_v50 }
  0xe8   :  { %v3149_v25 = vpop.f32.mrb[2].mxu0 }
  0xe9   :  { %v261_v26 = vpop.f32.mrb[3].mxu0  ;;  %3400 = vmatpush3.bf16.msra.mxu0 %v3397_v50  ;;  %v2949_v50 = vld [vmem:[%s3935_s2 + $0x48] sm:$0xff] }
  0xea   :  { %3156 = vmatpush3.msra.mxu1 %v261_v26  ;;  %3410 = vmatprep.subr.bf16.mxu0 %v3409_v10  ;;  %v3425_v53 = vpack.c.bf16 %v2949_v50, %v2948_v49 }
  0xeb   :  { %3165 = vmatprep.subr.mxu1 %v3526_v20 }
  0xec   :  { %3179 = vmatmul.mubr.msk.f32.vlgmr.msra.gmra.mrb[6].mxu0 %vm30_vm0, %v3614_v18 }
  0xed   :  { %3200 = vmatprep.mubr.msk.f32.mxu0 %vm30_vm0, %v3593_v11  ;;  %3412 = vmatpush3.bf16.msra.mxu0 %v3409_v10  ;;  %v2954_v10 = vld [vmem:[%s3936_s3 + $0x40] sm:$0xff] }
  0xee   :  { %3414 = vmatprep.subr.bf16.mxu0 %v3413_v13 }
  0xf1   :  { %3416 = vmatpush3.bf16.msra.mxu0 %v3413_v13  ;;  %v2956_v13 = vld [vmem:[%s3936_s3 + $0x50] sm:$0xff] }
  0xf2   :  { %3213 = vmatprep.subr.mxu0 %v3526_v20 }
  0xf4   :  { %3201 = vmatmul.mubr.msk.f32.vlgmr.msra.gmra.mrb[8].mxu0 %vm30_vm0, %v3614_v18 }
  0xf5   :  { %3215 = vmatprep.mubr.msk.f32.mxu0 %vm3527_vm1, %v3526_v20 }
 0x1b6   :  { %v505_v27 = vpop.f32.mrb[4].mxu0 }
 0x1b7   :  { %v343_v28 = vpop.f32.mrb[2].mxu1  ;;  %v3164_v29 = vpop.f32.mrb[5].mxu0  ;;  %v509_v32 = vmul.f32 0.35355338, %v505_v27  ;;  %v2934_v27 = vld [vmem:[%s3937_s4 + $0x8] sm:$0xff] }
 0x1b8   :  { %v347_v30 = vmul.f32 0.35355338, %v343_v28  ;;  %v3154_v31 = vpop.f32.mrb[3].mxu1  ;;  %3214 = vmatpush3.msra.mxu0 %v2934_v27 }
 0x1b9   :  { %v510_v34 = vsel %vm270_vm2, %v509_v32, -inf  ;;  %3223 = vmatprep.subr.mxu0 %v3526_v20  ;;  %v432_v31 = vld [vmem:[%s3937_s4] sm:$0xff] }
 0x1ba   :  { %v348_v33 = vsel %vm270_vm2, %v347_v30, -inf }
 0x1bb   :  { %349 = vmax.xlane.f32.xlu0 %v348_v33 }
 0x1bf   :  { %511 = vmax.xlane.f32.xlu0 %v510_v34  ;;  %v3683_v63 = vpop.f32.mrb[6].mxu0 }
 0x1c0   :  { %v665_v0 = vpop.f32.mrb[7].mxu0 }
 0x248   :  { %v350_v35 = vpop.xlane.xlu0 %349 }
 0x249   :  { %v351_v36 = vsub.f32 %v347_v30, %v350_v35 }
 0x24b   :  { %v352_v37 = vmul.f32 1.442695, %v351_v36 }
 0x24c   :  { %v512_v38 = vpop.xlane.xlu0 %511 }
 0x24d   :  { %3470 = vpow2.f32 %v352_v37  ;;  %v513_v39 = vsub.f32 %v509_v32, %v512_v38 }
 0x24f   :  { %v514_v40 = vmul.f32 1.442695, %v513_v39 }
 0x251   :  { %3472 = vpow2.f32 %v514_v40 }
 0x257   :  { %v3471_v41 = vpop.eup %3470 }
 0x258   :  { %v354_v42 = vsel %vm270_vm2, %v3471_v41, 0.0 }
 0x259   :  { %355 = vadd.xlane.f32.xlu1 %v354_v42 }
 0x25b   :  { %v3473_v43 = vpop.eup %3472 }
 0x25c   :  { %v516_v44 = vsel %vm270_vm2, %v3473_v43, 0.0 }
 0x25d   :  { %517 = vadd.xlane.f32.xlu1 %v516_v44 }
 0x2e6   :  { %v356_v51 = vpop.xlane.xlu1 %355 }
 0x2e7   :  { %3474 = vrcp.f32 %v356_v51 }
 0x2ea   :  { %v518_v52 = vpop.xlane.xlu1 %517 }
 0x2eb   :  { %3476 = vrcp.f32 %v518_v52 }
 0x2f1   :  { %v3475_v55 = vpop.eup %3474 }
 0x2f2   :  { %v358_v56 = vmul.f32 %v3475_v55, %v3471_v41  ;;  %v2943_v55 = vld [vmem:[%s3934_s1 + $0x48] sm:$0xff] }
 0x2f4   :  { %3158 = vmatmul.mubr.msk.f32.vlgmr.msra.gmra.mrb[4].mxu1 %vm270_vm2, %v358_v56  ;;  %v2950_v56 = vld [vmem:[%s3935_s2 + $0x50] sm:$0xff] }
 0x2f5   :  { %v3477_v60 = vpop.eup %3476  ;;  %3166 = vmatpush3.msra.mxu1 %v3149_v25  ;;  %3167 = vmatprep.mubr.msk.f32.mxu1 %vm3527_vm1, %v3526_v20  ;;  %v3202_v25 = vpop.f32.mrb[8].mxu0  ;;  %v3429_v59 = vpack.c.bf16 %v2951_v58, %v2950_v56  ;;  %v2972_v58 = vld [vmem:[%s3934_s1 + $0x78] sm:$0xff] }
 0x2f6   :  { %v520_v61 = vmul.f32 %v3477_v60, %v3473_v43  ;;  %3402 = vmatprep.subr.bf16.mxu1 %v3401_v57  ;;  %v825_v26 = vpop.f32.mrb[9].mxu0  ;;  %v2944_v60 = vld [vmem:[%s3934_s1 + $0x50] sm:$0xff] }
 0x2f8   :  { %3168 = vmatmul.mubr.msk.f32.vlgmr.msra.gmra.mrb[6].mxu1 %vm270_vm2, %v520_v61  ;;  %v2945_v61 = vld [vmem:[%s3934_s1 + $0x58] sm:$0xff] }
 0x2f9   :  { %3404 = vmatpush3.bf16.msra.mxu1 %v3401_v57  ;;  %3189 = vmatprep.mubr.msk.f32.mxu1 %vm30_vm0, %v3593_v11  ;;  %v3417_v57 = vpack.c.bf16 %v2943_v55, %v2942_v54  ;;  %v2969_v54 = vld [vmem:[%s3934_s1 + $0x60] sm:$0xff]  ;;  %v2970_v55 = vld [vmem:[%s3934_s1 + $0x68] sm:$0xff] }
 0x2fa   :  { %3406 = vmatprep.subr.bf16.mxu1 %v3405_v62  ;;  %v3441_v56 = vpack.c.bf16 %v2970_v55, %v2969_v54 }
 0x2fd   :  { %3408 = vmatpush3.bf16.msra.mxu1 %v3405_v62  ;;  %v3421_v62 = vpack.c.bf16 %v2945_v61, %v2944_v60  ;;  %v2977_v60 = vld [vmem:[%s3935_s2 + $0x70] sm:$0xff]  ;;  %v2978_v61 = vld [vmem:[%s3935_s2 + $0x78] sm:$0xff] }
 0x2fe   :  { %3203 = vmatprep.subr.mxu1 %v3526_v20 }
 0x300   :  { %3190 = vmatmul.mubr.msk.f32.vlgmr.msra.gmra.mrb[8].mxu1 %vm30_vm0, %v3614_v18 }
 0x301   :  { %3205 = vmatprep.mubr.msk.f32.mxu1 %vm3527_vm1, %v3526_v20 }
 0x3c7   :  { %v428_v1 = vpop.f32.mrb[4].mxu1 }
 0x3c8   :  { %v3159_v2 = vpop.f32.mrb[5].mxu1 }
 0x3cb   :  { %v3685_v3 = vpop.f32.mrb[6].mxu1 }
 0x3cc   :  { %v3169_v4 = vpop.f32.mrb[7].mxu1 }
 0x3d3   :  { %v3191_v5 = vpop.f32.mrb[8].mxu1 }
 0x3d4   :  { %v745_v6 = vpop.f32.mrb[9].mxu1 }
 0x3d5   :  { %3204 = vmatpush3.xpose.msk.msra.mxu1 %vm270_vm2, %v745_v6 }
 0x3d6   :  { %3208 = vmatprep.subr.mxu1 %v3526_v20 }
 0x3d8   :  { %3206 = vmatmul.mubr.msk.f32.vlgmr.msra.gmra.mrb[10].mxu1 %vm270_vm2, %v665_v0 }
 0x3d9   :  { %3210 = vmatprep.mubr.msk.f32.mxu1 %vm3527_vm1, %v3526_v20  ;;  %3209 = vmatpush3.msra.mxu1 %v825_v26 }
 0x3da   :  { %3218 = vmatprep.subr.mxu1 %v3526_v20 }
 0x4ab   :  { %v906_v14 = vpop.f32.mrb[10].mxu1 }
 0x4ac   :  { %v910_v15 = vmul.f32 0.35355338, %v906_v14  ;;  %v3207_v16 = vpop.f32.mrb[11].mxu1  ;;  %v3433_v14 = vpack.c.bf16 %v2955_v12, %v2954_v10  ;;  %v2984_v12 = vld [vmem:[%s3936_s3 + $0x78] sm:$0xff] }
 0x4ae   :  { %v911_v17 = vsel %vm270_vm2, %v910_v15, -inf }
 0x4af   :  { %912 = vmax.xlane.f32.xlu0 %v911_v17 }
 0x53c   :  { %v913_v19 = vpop.xlane.xlu0 %912 }
 0x53d   :  { %v914_v21 = vsub.f32 %v910_v15, %v913_v19  ;;  %v2957_v15 = vld [vmem:[%s3936_s3 + $0x58] sm:$0xff] }
 0x53e   :  { %v3437_v16 = vpack.c.bf16 %v2957_v15, %v2956_v13 }
 0x53f   :  { %v915_v22 = vmul.f32 1.442695, %v914_v21 }
 0x541   :  { %3478 = vpow2.f32 %v915_v22 }
 0x54b   :  { %v3479_v23 = vpop.eup %3478 }
 0x54c   :  { %v917_v24 = vsel %vm270_vm2, %v3479_v23, 0.0 }
 0x54d   :  { %918 = vadd.xlane.f32.xlu1 %v917_v24 }
 0x5da   :  { %v919_v28 = vpop.xlane.xlu1 %918 }
 0x5db   :  { %3480 = vrcp.f32 %v919_v28 }
 0x5e5   :  { %v3481_v29 = vpop.eup %3480 }
 0x5e6   :  { %v921_v30 = vmul.f32 %v3481_v29, %v3479_v23 }
 0x5e8   :  { %3211 = vmatmul.mubr.msk.f32.vlgmr.msra.gmra.mrb[12].mxu1 %vm270_vm2, %v921_v30  ;;  %v2963_v30 = vld [vmem:[%s3937_s4 + $0x10] sm:$0xff] }
 0x5e9   :  { %3219 = vmatpush3.msra.mxu1 %v432_v31  ;;  %3220 = vmatprep.mubr.msk.f32.mxu1 %vm3527_vm1, %v3526_v20 }
 0x5ea   :  { %3228 = vmatprep.subr.mxu1 %v3526_v20 }
 0x5ec   :  { %3221 = vmatmul.mubr.msk.f32.vlgmr.msra.gmra.mrb[14].mxu1 %vm270_vm2, %v428_v1 }
 0x5ed   :  { %3229 = vmatpush3.msra.mxu1 %v3202_v25  ;;  %3230 = vmatprep.mubr.msk.f32.mxu1 %vm3527_vm1, %v3526_v20 }
 0x5ee   :  { %3238 = vmatprep.subr.mxu1 %v3526_v20 }
 0x6bb   :  { %v991_v32 = vpop.f32.mrb[12].mxu1 }
 0x6bc   :  { %v3212_v33 = vpop.f32.mrb[13].mxu1  ;;  %3216 = vmatmul.mubr.msk.f32.vlgmr.msra.gmra.mrb[10].mxu0 %vm270_vm2, %v991_v32 }
 0x6bd   :  { %3224 = vmatpush3.xpose.msk.msra.mxu0 %vm270_vm2, %v3191_v5  ;;  %3225 = vmatprep.mubr.msk.f32.mxu0 %vm3527_vm1, %v3526_v20 }
 0x6be   :  { %3233 = vmatprep.subr.mxu0 %v3526_v20 }
 0x6bf   :  { %v1139_v34 = vpop.f32.mrb[14].mxu1 }
 0x6c0   :  { %v3222_v35 = vpop.f32.mrb[15].mxu1  ;;  %3226 = vmatmul.mubr.msk.f32.vlgmr.msra.gmra.mrb[12].mxu0 %vm270_vm2, %v3683_v63 }
 0x6c1   :  { %3234 = vmatpush3.msra.mxu0 %v2934_v27  ;;  %3235 = vmatprep.mubr.msk.f32.mxu0 %vm3527_vm1, %v3526_v20 }
 0x6c2   :  { %3418 = vmatprep.subr.bf16.mxu0 %v3417_v57 }
 0x78f   :  { %v1066_v36 = vpop.f32.mrb[10].mxu0 }
 0x790   :  { %v3736_v37 = vadd.f32 %v1139_v34, %v1066_v36  ;;  %v3217_v38 = vpop.f32.mrb[11].mxu0 }
 0x793   :  { %v1215_v39 = vpop.f32.mrb[12].mxu0 }
 0x794   :  { %v1219_v40 = vmul.f32 0.35355338, %v1215_v39  ;;  %v3227_v41 = vpop.f32.mrb[13].mxu0 }
 0x796   :  { %v1220_v42 = vsel %vm270_vm2, %v1219_v40, -inf }
 0x797   :  { %1221 = vmax.xlane.f32.xlu0 %v1220_v42 }
 0x824   :  { %v1222_v43 = vpop.xlane.xlu0 %1221 }
 0x825   :  { %v1223_v44 = vsub.f32 %v1219_v40, %v1222_v43 }
 0x827   :  { %v1224_v45 = vmul.f32 1.442695, %v1223_v44 }
 0x829   :  { %3482 = vpow2.f32 %v1224_v45 }
 0x833   :  { %v3483_v46 = vpop.eup %3482 }
 0x834   :  { %v1226_v47 = vsel %vm270_vm2, %v3483_v46, 0.0 }
 0x835   :  { %1227 = vadd.xlane.f32.xlu1 %v1226_v47 }
 0x8c2   :  { %v1228_v48 = vpop.xlane.xlu1 %1227 }
 0x8c3   :  { %3484 = vrcp.f32 %v1228_v48 }
 0x8cd   :  { %v3485_v51 = vpop.eup %3484 }
 0x8ce   :  { %v1230_v52 = vmul.f32 %v3485_v51, %v3483_v46 }
 0x8d0   :  { %3231 = vmatmul.mubr.msk.f32.vlgmr.msra.gmra.mrb[16].mxu1 %vm270_vm2, %v1230_v52  ;;  %v2975_v52 = vld [vmem:[%s3935_s2 + $0x60] sm:$0xff] }
 0x8d1   :  { %3239 = vmatpush3.msra.mxu1 %v432_v31  ;;  %3240 = vmatprep.mubr.msk.f32.mxu1 %vm3527_vm1, %v3526_v20 }
 0x8d2   :  { %3426 = vmatprep.subr.bf16.mxu1 %v3425_v53 }
 0x8d4   :  { %3241 = vmatmul.mubr.msk.f32.vlgmr.msra.gmra.mrb[18].mxu1 %vm270_vm2, %v3685_v3 }
 0x8d5   :  { %3428 = vmatpush3.bf16.msra.mxu1 %v3425_v53  ;;  %3262 = vmatprep.mubr.msk.f32.mxu1 %vm30_vm0, %v3593_v11  ;;  %v2976_v53 = vld [vmem:[%s3935_s2 + $0x68] sm:$0xff] }
 0x8d6   :  { %3430 = vmatprep.subr.bf16.mxu1 %v3429_v59 }
 0x8d9   :  { %3432 = vmatpush3.bf16.msra.mxu1 %v3429_v59 }
 0x8da   :  { %3276 = vmatprep.subr.mxu1 %v3526_v20 }
 0x8dc   :  { %3263 = vmatmul.mubr.msk.f32.vlgmr.msra.gmra.mrb[20].mxu1 %vm30_vm0, %v3614_v18 }
 0x8dd   :  { %3278 = vmatprep.mubr.msk.f32.mxu1 %vm3527_vm1, %v3526_v20 }
 0x9a3   :  { %v1300_v63 = vpop.f32.mrb[16].mxu1 }
 0x9a4   :  { %v3232_v0 = vpop.f32.mrb[17].mxu1  ;;  %3236 = vmatmul.mubr.msk.f32.vlgmr.msra.gmra.mrb[14].mxu0 %vm270_vm2, %v1300_v63 }
 0x9a5   :  { %3420 = vmatpush3.bf16.msra.mxu0 %v3417_v57  ;;  %3251 = vmatprep.mubr.msk.f32.mxu0 %vm30_vm0, %v3593_v11  ;;  %v2971_v57 = vld [vmem:[%s3934_s1 + $0x70] sm:$0xff] }
 0x9a6   :  { %3422 = vmatprep.subr.bf16.mxu0 %v3421_v62  ;;  %v3445_v59 = vpack.c.bf16 %v2972_v58, %v2971_v57 }
 0x9a7   :  { %v1446_v1 = vpop.f32.mrb[18].mxu1 }
 0x9a8   :  { %v3242_v2 = vpop.f32.mrb[19].mxu1 }
 0x9a9   :  { %3424 = vmatpush3.bf16.msra.mxu0 %v3421_v62  ;;  %v3453_v62 = vpack.c.bf16 %v2978_v61, %v2977_v60 }
 0x9aa   :  { %3434 = vmatprep.subr.bf16.mxu0 %v3433_v14 }
 0x9ac   :  { %3252 = vmatmul.mubr.msk.f32.vlgmr.msra.gmra.mrb[16].mxu0 %vm30_vm0, %v3614_v18 }
 0x9ad   :  { %3273 = vmatprep.mubr.msk.f32.mxu0 %vm30_vm0, %v3593_v11  ;;  %3436 = vmatpush3.bf16.msra.mxu0 %v3433_v14 }
 0x9ae   :  { %3438 = vmatprep.subr.bf16.mxu0 %v3437_v16 }
 0x9af   :  { %v3264_v3 = vpop.f32.mrb[20].mxu1 }
 0x9b0   :  { %v1601_v4 = vpop.f32.mrb[21].mxu1 }
 0x9b1   :  { %3277 = vmatpush3.xpose.msk.msra.mxu1 %vm270_vm2, %v1601_v4  ;;  %3440 = vmatpush3.bf16.msra.mxu0 %v3437_v16 }
 0x9b2   :  { %3281 = vmatprep.subr.mxu1 %v3526_v20  ;;  %3286 = vmatprep.subr.mxu0 %v3526_v20 }
 0x9b4   :  { %3274 = vmatmul.mubr.msk.f32.vlgmr.msra.gmra.mrb[18].mxu0 %vm30_vm0, %v3614_v18 }
 0x9b5   :  { %3288 = vmatprep.mubr.msk.f32.mxu0 %vm3527_vm1, %v3526_v20  ;;  %3287 = vmatpush3.msra.mxu0 %v2963_v30 }
 0x9b6   :  { %3296 = vmatprep.subr.mxu0 %v3526_v20 }
 0xa77   :  { %v1373_v5 = vpop.f32.mrb[14].mxu0 }
 0xa78   :  { %v3785_v6 = vadd.f32 %v1446_v1, %v1373_v5  ;;  %v3237_v7 = vpop.f32.mrb[15].mxu0 }
 0xa7f   :  { %v3253_v8 = vpop.f32.mrb[16].mxu0 }
 0xa80   :  { %v1521_v9 = vpop.f32.mrb[17].mxu0 }
 0xa81   :  { %3279 = vmatmul.mubr.msk.f32.vlgmr.msra.gmra.mrb[22].mxu1 %vm270_vm2, %v1521_v9  ;;  %v2983_v9 = vld [vmem:[%s3936_s3 + $0x70] sm:$0xff] }
 0xa82   :  { %3283 = vmatprep.mubr.msk.f32.mxu1 %vm3527_vm1, %v3526_v20  ;;  %v3461_v13 = vpack.c.bf16 %v2984_v12, %v2983_v9 }
 0xa87   :  { %v3275_v28 = vpop.f32.mrb[18].mxu0 }
 0xa88   :  { %v1681_v29 = vpop.f32.mrb[19].mxu0 }
 0xa89   :  { %3282 = vmatpush3.msra.mxu1 %v1681_v29 }
 0xa8a   :  { %3291 = vmatprep.subr.mxu1 %v3526_v20 }
 0xb54   :  { %v1762_v17 = vpop.f32.mrb[22].mxu1 }
 0xb55   :  { %v1766_v19 = vmul.f32 0.35355338, %v1762_v17  ;;  %v3280_v21 = vpop.f32.mrb[23].mxu1 }
 0xb57   :  { %v1767_v22 = vsel %vm270_vm2, %v1766_v19, -inf }
 0xb58   :  { %1768 = vmax.xlane.f32.xlu0 %v1767_v22 }
 0xbe5   :  { %v1769_v23 = vpop.xlane.xlu0 %1768 }
 0xbe6   :  { %v1770_v24 = vsub.f32 %v1766_v19, %v1769_v23 }
 0xbe8   :  { %v1771_v25 = vmul.f32 1.442695, %v1770_v24 }
 0xbea   :  { %3486 = vpow2.f32 %v1771_v25 }
 0xbf4   :  { %v3487_v26 = vpop.eup %3486 }
 0xbf5   :  { %v1773_v27 = vsel %vm270_vm2, %v3487_v26, 0.0 }
 0xbf6   :  { %1774 = vadd.xlane.f32.xlu1 %v1773_v27 }
 0xc83   :  { %v1775_v31 = vpop.xlane.xlu1 %1774 }
 0xc84   :  { %3488 = vrcp.f32 %v1775_v31 }
 0xc8e   :  { %v3489_v32 = vpop.eup %3488 }
 0xc8f   :  { %v1777_v33 = vmul.f32 %v3489_v32, %v3487_v26 }
 0xc91   :  { %3284 = vmatmul.mubr.msk.f32.vlgmr.msra.gmra.mrb[24].mxu1 %vm270_vm2, %v1777_v33 }
 0xc92   :  { %3292 = vmatpush3.xpose.msk.msra.mxu1 %vm270_vm2, %v3264_v3  ;;  %3293 = vmatprep.mubr.msk.f32.mxu1 %vm3527_vm1, %v3526_v20 }
 0xc93   :  { %3301 = vmatprep.subr.mxu1 %v3526_v20 }
 0xc95   :  { %3294 = vmatmul.mubr.msk.f32.vlgmr.msra.gmra.mrb[26].mxu1 %vm270_vm2, %v3253_v8 }
 0xc96   :  { %3302 = vmatpush3.msra.mxu1 %v2963_v30  ;;  %3303 = vmatprep.mubr.msk.f32.mxu1 %vm3527_vm1, %v3526_v20 }
 0xd64   :  { %v1847_v34 = vpop.f32.mrb[24].mxu1 }
 0xd65   :  { %v3285_v35 = vpop.f32.mrb[25].mxu1  ;;  %3289 = vmatmul.mubr.msk.f32.vlgmr.msra.gmra.mrb[20].mxu0 %vm270_vm2, %v1847_v34 }
 0xd66   :  { %3297 = vmatpush3.msra.mxu0 %v3275_v28  ;;  %3298 = vmatprep.mubr.msk.f32.mxu0 %vm3527_vm1, %v3526_v20 }
 0xd67   :  { %3442 = vmatprep.subr.bf16.mxu0 %v3441_v56 }
 0xd68   :  { %v1999_v36 = vpop.f32.mrb[26].mxu1 }
 0xd69   :  { %v2003_v38 = vmul.f32 0.35355338, %v1999_v36  ;;  %v3295_v39 = vpop.f32.mrb[27].mxu1 }
 0xd6b   :  { %v2004_v40 = vsel %vm270_vm2, %v2003_v38, -inf }
 0xd6c   :  { %2005 = vmax.xlane.f32.xlu0 %v2004_v40 }
 0xdf9   :  { %v2006_v41 = vpop.xlane.xlu0 %2005 }
 0xdfa   :  { %v2007_v42 = vsub.f32 %v2003_v38, %v2006_v41 }
 0xdfc   :  { %v2008_v43 = vmul.f32 1.442695, %v2007_v42 }
 0xdfe   :  { %3490 = vpow2.f32 %v2008_v43  ;;  %v2996_v43 = vld [vmem:[%s3938_s5] ss:$0 sm:$0xff]  ;;  %s3502_s5 = scalar_lea.vmem %s2891_s28, 256 }
 0xdff   :  { %p3503_p0 = scmp.ne.s32.totalorder %s2891_s28, %s3502_s5  ;;  %p3508_p2 = scmp.lt.s32.totalorder %s3502_s5, %s3502_s5 }
 0xe01   :  { %p3509_p3 = por %p3508_p2, %p3507_p1 }
 0xe03   :  { %p3510_p4 = pnand %p3509_p3, %p3503_p0 }
 0xe08   :  { %v3491_v44 = vpop.eup %3490 }
 0xe09   :  { %v2010_v45 = vsel %vm270_vm2, %v3491_v44, 0.0 }
 0xe0a   :  { %2011 = vadd.xlane.f32.xlu1 %v2010_v45 }
 0xe38   :  { %v1922_v46 = vpop.f32.mrb[20].mxu0 }
 0xe39   :  { %v3828_v47 = vadd.f32 %v1922_v46, %v3736_v37  ;;  %v3290_v48 = vpop.f32.mrb[21].mxu0  ;;  %v3449_v37 = vpack.c.bf16 %v2976_v53, %v2975_v52 }
 0xe3b   :  { %3450 = vmatprep.subr.bf16.mxu1 %v3449_v37 }
 0xe97   :  { %v2012_v49 = vpop.xlane.xlu1 %2011 }
 0xe98   :  { %3492 = vrcp.f32 %v2012_v49 }
 0xea2   :  { %v3493_v50 = vpop.eup %3492 }
 0xea3   :  { %v2014_v51 = vmul.f32 %v3493_v50, %v3491_v44 }
 0xea5   :  { %3299 = vmatmul.mubr.msk.f32.vlgmr.msra.gmra.mrb[22].mxu0 %vm270_vm2, %v2014_v51 }
 0xea6   :  { %3314 = vmatprep.mubr.msk.f32.mxu0 %vm30_vm0, %v3593_v11  ;;  %3444 = vmatpush3.bf16.msra.mxu0 %v3441_v56 }
 0xea7   :  { %3446 = vmatprep.subr.bf16.mxu0 %v3445_v59 }
 0xeaa   :  { %3448 = vmatpush3.bf16.msra.mxu0 %v3445_v59 }
 0xead   :  { %3315 = vmatmul.mubr.msk.f32.vlgmr.msra.gmra.mrb[24].mxu0 %vm30_vm0, %v3614_v18 }
 0xeae   :  { %3336 = vmatprep.mubr.msk.f32.mxu0 %vm30_vm0, %v3593_v11 }
 0xf78   :  { %v2084_v63 = vpop.f32.mrb[22].mxu0 }
 0xf79   :  { %v3300_v0 = vpop.f32.mrb[23].mxu0  ;;  %3304 = vmatmul.mubr.msk.f32.vlgmr.msra.gmra.mrb[28].mxu1 %vm270_vm2, %v2084_v63 }
 0xf7a   :  { %3452 = vmatpush3.bf16.msra.mxu1 %v3449_v37  ;;  %3325 = vmatprep.mubr.msk.f32.mxu1 %vm30_vm0, %v3593_v11  ;;  %v2981_v11 = vld [vmem:[%s3936_s3 + $0x60] sm:$0xff] }
 0xf7b   :  { %3454 = vmatprep.subr.bf16.mxu1 %v3453_v62 }
 0xf7e   :  { %3456 = vmatpush3.bf16.msra.mxu1 %v3453_v62 }
 0xf7f   :  { %3339 = vmatprep.subr.mxu1 %v3526_v20 }
 0xf80   :  { %v3316_v1 = vpop.f32.mrb[24].mxu0 }
 0xf81   :  { %3326 = vmatmul.mubr.msk.f32.vlgmr.msra.gmra.mrb[30].mxu1 %vm30_vm0, %v3614_v18  ;;  %v2233_v2 = vpop.f32.mrb[25].mxu0 }
 0xf82   :  { %3341 = vmatprep.mubr.msk.f32.mxu1 %vm3527_vm1, %v3526_v20 }
0x104c   :  { %v2157_v3 = vpop.f32.mrb[28].mxu1 }
0x104d   :  { %v3870_v4 = vadd.f32 %v2157_v3, %v3785_v6  ;;  %v3305_v5 = vpop.f32.mrb[29].mxu1  ;;  %v2982_v6 = vld [vmem:[%s3936_s3 + $0x68] sm:$0xff] }
0x104e   :  { %v3457_v10 = vpack.c.bf16 %v2982_v6, %v2981_v11 }
0x1050   :  { %3458 = vmatprep.subr.bf16.mxu0 %v3457_v10 }
0x1051   :  { %3460 = vmatpush3.bf16.msra.mxu0 %v3457_v10 }
0x1052   :  { %3462 = vmatprep.subr.bf16.mxu0 %v3461_v13 }
0x1054   :  { %v3327_v7 = vpop.f32.mrb[30].mxu1 }
0x1055   :  { %v2313_v8 = vpop.f32.mrb[31].mxu1  ;;  %3464 = vmatpush3.bf16.msra.mxu0 %v3461_v13 }
0x1056   :  { %3340 = vmatpush3.xpose.msk.msra.mxu1 %vm270_vm2, %v2313_v8  ;;  %3349 = vmatprep.subr.mxu0 %v3526_v20 }
0x1057   :  { %3344 = vmatprep.subr.mxu1 %v3526_v20 }
0x1058   :  { %3337 = vmatmul.mubr.msk.f32.vlgmr.msra.gmra.mrb[26].mxu0 %vm30_vm0, %v3614_v18  ;;  %v2990_v18 = vld [vmem:[%s3937_s4 + $0x18] sm:$0xff] }
0x1059   :  { %3342 = vmatmul.mubr.msk.f32.vlgmr.msra.gmra.mrb[32].mxu1 %vm270_vm2, %v2233_v2  ;;  %3351 = vmatprep.mubr.msk.f32.mxu0 %vm3527_vm1, %v3526_v20 }
0x105a   :  { %3346 = vmatprep.mubr.msk.f32.mxu1 %vm3527_vm1, %v3526_v20  ;;  %3350 = vmatpush3.msra.mxu0 %v2990_v18 }
0x105b   :  { %3359 = vmatprep.subr.mxu0 %v3526_v20 }
0x112b   :  { %v3338_v25 = vpop.f32.mrb[26].mxu0 }
0x112c   :  { %v2474_v14 = vpop.f32.mrb[32].mxu1  ;;  %v2393_v26 = vpop.f32.mrb[27].mxu0 }
0x112d   :  { %v2478_v15 = vmul.f32 0.35355338, %v2474_v14  ;;  %v3343_v16 = vpop.f32.mrb[33].mxu1  ;;  %3345 = vmatpush3.msra.mxu1 %v2393_v26 }
0x112e   :  { %3354 = vmatprep.subr.mxu1 %v3526_v20 }
0x112f   :  { %v2479_v17 = vsel %vm270_vm2, %v2478_v15, -inf }
0x1130   :  { %2480 = vmax.xlane.f32.xlu0 %v2479_v17 }
0x11bd   :  { %v2481_v19 = vpop.xlane.xlu0 %2480 }
0x11be   :  { %v2482_v21 = vsub.f32 %v2478_v15, %v2481_v19 }
0x11c0   :  { %v2483_v22 = vmul.f32 1.442695, %v2482_v21 }
0x11c2   :  { %3494 = vpow2.f32 %v2483_v22 }
0x11cc   :  { %v3495_v23 = vpop.eup %3494 }
0x11cd   :  { %v2485_v24 = vsel %vm270_vm2, %v3495_v23, 0.0 }
0x11ce   :  { %2486 = vadd.xlane.f32.xlu1 %v2485_v24 }
0x125b   :  { %v2487_v27 = vpop.xlane.xlu1 %2486 }
0x125c   :  { %3496 = vrcp.f32 %v2487_v27 }
0x1266   :  { %v3497_v28 = vpop.eup %3496 }
0x1267   :  { %v2489_v29 = vmul.f32 %v3497_v28, %v3495_v23 }
0x1269   :  { %3347 = vmatmul.mubr.msk.f32.vlgmr.msra.gmra.mrb[34].mxu1 %vm270_vm2, %v2489_v29 }
0x126a   :  { %3355 = vmatpush3.xpose.msk.msra.mxu1 %vm270_vm2, %v3327_v7  ;;  %3356 = vmatprep.mubr.msk.f32.mxu1 %vm3527_vm1, %v3526_v20 }
0x126b   :  { %3364 = vmatprep.subr.mxu1 %v3526_v20 }
0x126d   :  { %3357 = vmatmul.mubr.msk.f32.vlgmr.msra.gmra.mrb[36].mxu1 %vm270_vm2, %v3316_v1 }
0x126e   :  { %3365 = vmatpush3.msra.mxu1 %v2990_v18  ;;  %3366 = vmatprep.mubr.msk.f32.mxu1 %vm3527_vm1, %v3526_v20 }
0x133c   :  { %v2559_v30 = vpop.f32.mrb[34].mxu1 }
0x133d   :  { %v3348_v31 = vpop.f32.mrb[35].mxu1  ;;  %3352 = vmatmul.mubr.msk.f32.vlgmr.msra.gmra.mrb[28].mxu0 %vm270_vm2, %v2559_v30 }
0x133e   :  { %3360 = vmatpush3.msra.mxu0 %v3338_v25  ;;  %3361 = vmatprep.mubr.msk.f32.mxu0 %vm3527_vm1, %v3526_v20 }
0x1340   :  { %v2711_v32 = vpop.f32.mrb[36].mxu1 }
0x1341   :  { %v2715_v33 = vmul.f32 0.35355338, %v2711_v32  ;;  %v3358_v34 = vpop.f32.mrb[37].mxu1 }
0x1343   :  { %v2716_v35 = vsel %vm270_vm2, %v2715_v33, -inf }
0x1344   :  { %2717 = vmax.xlane.f32.xlu0 %v2716_v35 }
0x13d1   :  { %v2718_v36 = vpop.xlane.xlu0 %2717 }
0x13d2   :  { %v2719_v38 = vsub.f32 %v2715_v33, %v2718_v36 }
0x13d4   :  { %v2720_v39 = vmul.f32 1.442695, %v2719_v38 }
0x13d6   :  { %3498 = vpow2.f32 %v2720_v39 }
0x13e0   :  { %v3499_v40 = vpop.eup %3498 }
0x13e1   :  { %v2722_v41 = vsel %vm270_vm2, %v3499_v40, 0.0 }
0x13e2   :  { %2723 = vadd.xlane.f32.xlu1 %v2722_v41 }
0x1410   :  { %v2634_v42 = vpop.f32.mrb[28].mxu0 }
0x1411   :  { %v2638_v20 = vadd.f32 %v2634_v42, %v3828_v47  ;;  %v3353_v44 = vpop.f32.mrb[29].mxu0 }
0x1413   :  { %v2881_v45 = vadd.f32 %v2996_v43, %v2638_v20 }
0x1415   :  { %2882 = vst [vmem:[#allocation2] sm:$0xff] %v2881_v45 }
0x146f   :  { %v2724_v46 = vpop.xlane.xlu1 %2723 }
0x1470   :  { %3500 = vrcp.f32 %v2724_v46 }
0x147a   :  { %v3501_v48 = vpop.eup %3500 }
0x147b   :  { %v2726_v49 = vmul.f32 %v3501_v48, %v3499_v40 }
0x147d   :  { %3362 = vmatmul.mubr.msk.f32.vlgmr.msra.gmra.mrb[30].mxu0 %vm270_vm2, %v2726_v49 }
0x1550   :  { %v2796_v50 = vpop.f32.mrb[30].mxu0 }
0x1551   :  { %v3363_v51 = vpop.f32.mrb[31].mxu0  ;;  %3367 = vmatmul.mubr.msk.f32.vlgmr.msra.gmra.mrb[38].mxu1 %vm270_vm2, %v2796_v50 }
0x1624   :  { %v2869_v52 = vpop.f32.mrb[38].mxu1 }
0x1625   :  { %v2873_v53 = vadd.f32 %v2869_v52, %v3870_v4  ;;  %v3368_v37 = vpop.f32.mrb[39].mxu1 }
0x1627   :  { %v2883_v47 = vadd.f32 %v2996_v43, %v2873_v53 }
0x1629   :  { %2884 = vst [vmem:[#allocation2 + $0x8] sm:$0xff] %v2883_v47 }
0x162a   :  { %3513 = shalt.err (!%p3510_p4)
}
0x162b   :  { %s3514_s7 = scalar_lea.hbm %s3939_s6, 256 }
0x162c   :  { %p3515_p5 = scmp.ne.s32.totalorder %s3939_s6, %s3514_s7  ;;  %p3518_p6 = scmp.lt.u32.totalorder %s3514_s7, %s3939_s6 }
0x162e   :  { %p3520_p7 = pnand %p3518_p6, %p3515_p5 }
0x1630   :  { %3523 = shalt.err (!%p3520_p7)
}
0x1631   :  { %s3529_s12 = smov 128   ;;  %s3530_s13 = smov 8  }
0x1632   :  { %2896 = dma.vmem_to_hbm [thread:$0]  %s2891_s28, 256, %s3939_s6, [#allocation3], %s3529_s12, %s3529_s12, %s3530_s13  }
0x1633   :  { %3524 = dma.done.wait [#allocation3], 256  }
0x1634   :  { %3525 = vsyncadd [#allocation3], 4294967040 }
0x1635   :  { %2900 = vsyncpa [#allocation3], 1 }

</bundles_post_ra>
